<compile_context>
chip_gen: v7x
topology: tpu7x:2x2x1
jax: 0.10.0
libtpu: 0.0.40
codegen_flags: <defaults>
</compile_context>

<pallas_src>
import math
import numpy as np
import jax
import jax.numpy as jnp
from jax.experimental import pallas as pl
from jax.experimental.pallas import tpu as pltpu

MAX_PIXEL = 4095.0
F_PSNR = -2.0
F_SSIM = -0.2
K1 = 0.01
K2 = 0.02
WIN = 11          # window_size
SIGMA = 1.5
PAD = 1           # F.conv2d(..., padding=1)

_C1 = (K1 * MAX_PIXEL) ** 2
_C2 = (K2 * MAX_PIXEL) ** 2


def _gaussian_window_2d(size=WIN, sigma=SIGMA):
    # Exact replica of MYevaluate.Adgauss (np.mgrid with floor-div bounds).
    # Used only by the pure-JAX reference.
    x, y = np.mgrid[-size // 2 + 1:size // 2 + 1, -size // 2 + 1:size // 2 + 1]
    g = np.exp(-((x ** 2 + y ** 2) / (2.0 * sigma ** 2)))
    return (g / g.sum()).astype(np.float32)


def _gaussian_1d(size=WIN, sigma=SIGMA):
    # Separable factor: outer(w1, w1) == Adgauss window.
    x = np.arange(-size // 2 + 1, size // 2 + 1, dtype=np.float64)
    g = np.exp(-(x ** 2) / (2.0 * sigma ** 2))
    return g / g.sum()


def _banded_conv_matrix(in_dim, out_dim):
    """(in_dim, out_dim) matrix M such that  out[c] = sum_w M[w, c] * x[w]
    equals the 1-D 11-tap gaussian correlation of x zero-padded by PAD on each
    side (i.e. F.conv2d's padding=1 is folded into the matrix)."""
    w1d = _gaussian_1d()
    m = np.zeros((in_dim, out_dim), np.float64)
    for c in range(out_dim):
        for j in range(WIN):
            w = c + j - PAD
            if 0 <= w < in_dim:
                m[w, c] += w1d[j]
    return m.astype(np.float32)


def _make_kernel(bn, h, w, ho, wo):
    """Kernel with all static sizes baked in; processes bn images per step."""
    f = 5 * bn  # stacked fields: a, b, a*a, b*b, a*b per image

    def kernel(wh_ref, wv_ref, a_ref, b_ref, mse_ref, ssim_ref):
        # wh_ref : (W, Wo)    banded horizontal gaussian matrix (pad folded in)
        # wv_ref : (Ho, H)    banded vertical gaussian matrix   (pad folded in)
        # a_ref  : (bn, H, W) target block (img1)
        # b_ref  : (bn, H, W) input  block (img2)
        # mse_ref, ssim_ref : (1, 1, 1) per-step partial sums
        a = a_ref[...]
        b = b_ref[...]

        # ---- partial MSE sum (pure VPU, exact f32) ----
        d = a - b
        mse_ref[...] = jnp.broadcast_to(jnp.sum(d * d), (1, 1, 1))

        # ---- stack the 5 fields once: (5*bn, H, W) ----
        fields = jnp.concatenate([a, b, a * a, b * b, a * b], axis=0)

        # ---- horizontal gaussian pass: one MXU matmul over all fields ----
        hp = jnp.dot(fields.reshape(f * h, w), wh_ref[...],
                     preferred_element_type=jnp.float32).reshape(f, h, wo)

        # ---- vertical gaussian pass: batched MXU matmul ----
        wv_b = jnp.broadcast_to(wv_ref[...][None, :, :], (f, ho, h))
        conv = jnp.einsum('fij,fjk->fik', wv_b, hp,
                          preferred_element_type=jnp.float32)  # (f, Ho, Wo)

        mu1 = conv[0 * bn:1 * bn]
        mu2 = conv[1 * bn:2 * bn]
        s11 = conv[2 * bn:3 * bn]
        s22 = conv[3 * bn:4 * bn]
        s12 = conv[4 * bn:5 * bn]

        mu1_sq = mu1 * mu1
        mu2_sq = mu2 * mu2
        mu1_mu2 = mu1 * mu2
        sigma1_sq = s11 - mu1_sq
        sigma2_sq = s22 - mu2_sq
        sigma12 = s12 - mu1_mu2

        num = (2.0 * mu1_mu2 + _C1) * (2.0 * sigma12 + _C2)
        den = (mu1_sq + mu2_sq + _C1) * (sigma1_sq + sigma2_sq + _C2)
        # EUP approximate reciprocal + one Newton-Raphson refinement
        r = pl.reciprocal(den, approx=True)
        r = r * (2.0 - den * r)
        ssim_map = num * r
        ssim_ref[...] = jnp.broadcast_to(jnp.sum(ssim_map), (1, 1, 1))

    return kernel


def myevaluate_forward(inp, tgt):
    """Pallas equivalent of MYevaluate.forward(input, target)."""
    assert inp.shape == tgt.shape and inp.ndim == 4 and inp.shape[1] == 1, \
        "expected NCHW with C=1 (single-channel conv window)"
    n, _, h, w = inp.shape
    ho, wo = h + 2 * PAD - WIN + 1, w + 2 * PAD - WIN + 1
    assert ho > 0 and wo > 0, "image too small for the 11x11 window"

    a = tgt[:, 0].astype(jnp.float32)   # img1 = target
    b = inp[:, 0].astype(jnp.float32)   # img2 = input

    wh = jnp.asarray(_banded_conv_matrix(w, wo))      # (W, Wo)
    wv = jnp.asarray(_banded_conv_matrix(h, ho).T)    # (Ho, H)

    # ---- choose bn: largest divisor of n whose per-step footprint fits ----
    def footprint(d):
        f5 = 5 * d
        return 4 * (4 * d * h * w          # double-buffered input blocks
                    + f5 * h * w           # stacked fields
                    + f5 * h * wo          # horizontal-pass result
                    + f5 * ho * h          # broadcast vertical matrix
                    + 12 * d * ho * wo     # conv slices + ssim temporaries
                    + w * wo + ho * h)     # banded matrices

    budget = 24 * 1024 * 1024
    divisors = [d for d in range(1, n + 1) if n % d == 0]
    fitting = [d for d in divisors if footprint(d) <= budget]
    bn = max(fitting) if fitting else 1
    steps = n // bn

    # tight VMEM request with headroom, kept below v7x's 64 MiB physical VMEM
    vmem_limit = int(min(48 * 1024 * 1024,
                         max(8 * 1024 * 1024, 4 * footprint(bn))))

    kernel = _make_kernel(bn, h, w, ho, wo)

    # advisory cost estimate (MXU banded-matmul conv + elementwise ssim/mse)
    flops = int(n * (5 * 2 * (h * w * wo + h * wo * ho)   # two banded matmuls
                     + 6 * h * w                           # fields + mse
                     + 30 * ho * wo))                      # ssim map
    cost = pl.CostEstimate(flops=flops,
                           transcendentals=int(n * ho * wo),
                           bytes_accessed=int(2 * n * h * w * 4))

    mse_parts, ssim_parts = pl.pallas_call(
        kernel,
        out_shape=(jax.ShapeDtypeStruct((steps, 1, 1), jnp.float32),
                   jax.ShapeDtypeStruct((steps, 1, 1), jnp.float32)),
        grid_spec=pltpu.PrefetchScalarGridSpec(
            num_scalar_prefetch=0,
            grid=(steps,),
            in_specs=[
                pl.BlockSpec((w, wo), lambda i: (0, 0)),        # horiz matrix
                pl.BlockSpec((ho, h), lambda i: (0, 0)),        # vert  matrix
                pl.BlockSpec((bn, h, w), lambda i: (i, 0, 0)),  # target block
                pl.BlockSpec((bn, h, w), lambda i: (i, 0, 0)),  # input  block
            ],
            out_specs=[
                pl.BlockSpec((1, 1, 1), lambda i: (i, 0, 0)),   # mse partial
                pl.BlockSpec((1, 1, 1), lambda i: (i, 0, 0)),   # ssim partial
            ]),
        compiler_params=pltpu.CompilerParams(
            dimension_semantics=("parallel",),   # independent steps -> 2 TCs on v7x
            vmem_limit_bytes=vmem_limit),
        cost_estimate=cost,
    )(wh, wv, a, b)

    # tiny scalar combine (PSNR / MSSIM formula) in plain JAX
    mse = jnp.sum(mse_parts) / float(n * h * w)
    psnr = 10.0 * jnp.log10((MAX_PIXEL * MAX_PIXEL) / mse)
    mssim = jnp.sum(ssim_parts) / float(n * ho * wo)
    return F_PSNR * psnr + F_SSIM * mssim


def _reference_forward(inp, tgt):
    """Pure-JAX reference mirroring the PyTorch module (for verification)."""
    win = jnp.asarray(_gaussian_window_2d())[None, None]  # (1,1,11,11) OIHW

    def conv(x):
        return jax.lax.conv_general_dilated(
            x, win, window_strides=(1, 1), padding=((PAD, PAD), (PAD, PAD)),
            dimension_numbers=("NCHW", "OIHW", "NCHW"),
            precision=jax.lax.Precision.HIGHEST)

    img1, img2 = tgt.astype(jnp.float32), inp.astype(jnp.float32)
    mse = jnp.mean((img1 - img2) ** 2)
    psnr = 10.0 * jnp.log10((MAX_PIXEL ** 2) / mse)
    mu1, mu2 = conv(img1), conv(img2)
    mu1_sq, mu2_sq, mu1_mu2 = mu1 * mu1, mu2 * mu2, mu1 * mu2
    sigma1_sq = conv(img1 * img1) - mu1_sq
    sigma2_sq = conv(img2 * img2) - mu2_sq
    sigma12 = conv(img1 * img2) - mu1_mu2
    ssim_map = (2 * mu1_mu2 + _C1) * (2 * sigma12 + _C2) / (
        (mu1_sq + mu2_sq + _C1) * (sigma1_sq + sigma2_sq + _C2))
    return F_PSNR * psnr + F_SSIM * jnp.mean(ssim_map)


if __name__ == "__main__":
    key = jax.random.PRNGKey(0)
    k1, k2 = jax.random.split(key)
    N, C, H, W = 2, 1, 16, 16
    # pixel-scale data consistent with max_pixel = 4095
    inp = jax.random.uniform(k1, (N, C, H, W), jnp.float32) * MAX_PIXEL
    tgt = jax.random.uniform(k2, (N, C, H, W), jnp.float32) * MAX_PIXEL

    out = jax.block_until_ready(myevaluate_forward(inp, tgt))
    ref = jax.block_until_ready(_reference_forward(inp, tgt))
    assert np.allclose(np.asarray(out), np.asarray(ref), rtol=1e-3, atol=1e-3), (
        float(out), float(ref))

    print("KERNEL_OK")
</pallas_src>

<mosaic_0001>
module attributes {stable_mosaic.version = 11 : i64} {
  func.func @kernel(%arg0: i32, %arg1: memref<16x8xf32, #tpu.memory_space<vmem>>, %arg2: memref<8x16xf32, #tpu.memory_space<vmem>>, %arg3: memref<2x16x16xf32, #tpu.memory_space<vmem>>, %arg4: memref<2x16x16xf32, #tpu.memory_space<vmem>>, %arg5: memref<1x1x1xf32, #tpu.memory_space<vmem>>, %arg6: memref<1x1x1xf32, #tpu.memory_space<vmem>>) attributes {dimension_semantics = [#tpu.dimension_semantics<parallel>], iteration_bounds = array<i64: 1>, scalar_prefetch = 0 : i64, scratch_operands = 0 : i64, tpu.core_type = #tpu.core_type<tc>, window_params = [{pipeline_mode = #tpu.pipeline_mode<synchronous>, transform_indices = @transform_0, window_bounds = array<i64: 16, 8>}, {pipeline_mode = #tpu.pipeline_mode<synchronous>, transform_indices = @transform_1, window_bounds = array<i64: 8, 16>}, {transform_indices = @transform_2, window_bounds = array<i64: 2, 16, 16>}, {transform_indices = @transform_3, window_bounds = array<i64: 2, 16, 16>}, {transform_indices = @transform_4, window_bounds = array<i64: 1, 1, 1>}, {transform_indices = @transform_5, window_bounds = array<i64: 1, 1, 1>}]} {
    %c0 = arith.constant 0 : index
    %c0_0 = arith.constant 0 : index
    %c0_1 = arith.constant 0 : index
    %0 = vector.load %arg3[%c0, %c0_0, %c0_1] : memref<2x16x16xf32, #tpu.memory_space<vmem>>, vector<2x16x16xf32>
    %c0_2 = arith.constant 0 : index
    %c0_3 = arith.constant 0 : index
    %c0_4 = arith.constant 0 : index
    %1 = vector.load %arg4[%c0_2, %c0_3, %c0_4] : memref<2x16x16xf32, #tpu.memory_space<vmem>>, vector<2x16x16xf32>
    %2 = arith.subf %0, %1 : vector<2x16x16xf32>
    %3 = arith.mulf %2, %2 : vector<2x16x16xf32>
    %4 = vector.shape_cast %3 : vector<2x16x16xf32> to vector<1x2x16x16xf32>
    %cst = arith.constant dense<0.000000e+00> : vector<1xf32>
    %5 = vector.multi_reduction <add>, %4, %cst [1, 2, 3] : vector<1x2x16x16xf32> to vector<1xf32>
    %6 = vector.shape_cast %5 : vector<1xf32> to vector<1x1x1x1xf32>
    %7 = vector.extract %6[0, 0, 0, 0] : f32 from vector<1x1x1x1xf32>
    %8 = vector.broadcast %7 : f32 to vector<1x1x1xf32>
    %c0_5 = arith.constant 0 : index
    %c0_6 = arith.constant 0 : index
    %c0_7 = arith.constant 0 : index
    %9 = vector.load %arg5[%c0_5, %c0_6, %c0_7] : memref<1x1x1xf32, #tpu.memory_space<vmem>>, vector<1x1x1xf32>
    tpu.vector_store %arg5[%c0_5, %c0_6, %c0_7], %8 {strides = array<i32>} : memref<1x1x1xf32, #tpu.memory_space<vmem>>, vector<1x1x1xf32>,
    %10 = arith.mulf %0, %0 : vector<2x16x16xf32>
    %11 = arith.mulf %1, %1 : vector<2x16x16xf32>
    %12 = arith.mulf %0, %1 : vector<2x16x16xf32>
    %13 = tpu.concatenate %0, %1, %10, %11, %12 in 0 : vector<2x16x16xf32>, vector<2x16x16xf32>, vector<2x16x16xf32>, vector<2x16x16xf32>, vector<2x16x16xf32> -> vector<10x16x16xf32>
    %14 = vector.shape_cast %13 : vector<10x16x16xf32> to vector<160x16xf32>
    %c0_8 = arith.constant 0 : index
    %c0_9 = arith.constant 0 : index
    %15 = vector.load %arg1[%c0_8, %c0_9] : memref<16x8xf32, #tpu.memory_space<vmem>>, vector<16x8xf32>
    %cst_10 = arith.constant dense<0.000000e+00> : vector<160x8xf32>
    %16 = tpu.matmul %14, %15, %cst_10 {dimension_numbers = #tpu.dot_dimension_numbers<[1], [0], [0], [1], [0, 0, 1, 1], [], []>} : vector<160x16xf32>, vector<16x8xf32>, vector<160x8xf32> -> vector<160x8xf32>
    %17 = vector.shape_cast %16 : vector<160x8xf32> to vector<10x16x8xf32>
    %c0_11 = arith.constant 0 : index
    %c0_12 = arith.constant 0 : index
    %18 = vector.load %arg2[%c0_11, %c0_12] : memref<8x16xf32, #tpu.memory_space<vmem>>, vector<8x16xf32>
    %19 = vector.shape_cast %18 : vector<8x16xf32> to vector<1x8x16xf32>
    %20 = vector.shape_cast %19 : vector<1x8x16xf32> to vector<1x8x16xf32>
    %21 = vector.broadcast %20 : vector<1x8x16xf32> to vector<10x8x16xf32>
    "tpu.trace_start"() <{level = 10 : i32, message = "fij,fjk->fik"}> : () -> ()
    %cst_13 = arith.constant dense<0.000000e+00> : vector<10x8x8xf32>
    %22 = tpu.matmul %21, %17, %cst_13 {dimension_numbers = #tpu.dot_dimension_numbers<[2], [1], [1], [2], [0, 0, 0, 1, 1, 2], [0], [0]>} : vector<10x8x16xf32>, vector<10x16x8xf32>, vector<10x8x8xf32> -> vector<10x8x8xf32>
    "tpu.trace_stop"() : () -> ()
    %23 = vector.extract_strided_slice %22 {offsets = [0, 0, 0], sizes = [2, 8, 8], strides = [1, 1, 1]} : vector<10x8x8xf32> to vector<2x8x8xf32>
    %24 = vector.extract_strided_slice %22 {offsets = [2, 0, 0], sizes = [2, 8, 8], strides = [1, 1, 1]} : vector<10x8x8xf32> to vector<2x8x8xf32>
    %25 = vector.extract_strided_slice %22 {offsets = [4, 0, 0], sizes = [2, 8, 8], strides = [1, 1, 1]} : vector<10x8x8xf32> to vector<2x8x8xf32>
    %26 = vector.extract_strided_slice %22 {offsets = [6, 0, 0], sizes = [2, 8, 8], strides = [1, 1, 1]} : vector<10x8x8xf32> to vector<2x8x8xf32>
    %27 = vector.extract_strided_slice %22 {offsets = [8, 0, 0], sizes = [2, 8, 8], strides = [1, 1, 1]} : vector<10x8x8xf32> to vector<2x8x8xf32>
    %28 = arith.mulf %23, %23 : vector<2x8x8xf32>
    %29 = arith.mulf %24, %24 : vector<2x8x8xf32>
    %30 = arith.mulf %23, %24 : vector<2x8x8xf32>
    %31 = arith.subf %25, %28 : vector<2x8x8xf32>
    %32 = arith.subf %26, %29 : vector<2x8x8xf32>
    %33 = arith.subf %27, %30 : vector<2x8x8xf32>
    %cst_14 = arith.constant 2.000000e+00 : f32
    %34 = vector.broadcast %cst_14 : f32 to vector<2x8x8xf32>
    %35 = arith.mulf %34, %30 : vector<2x8x8xf32>
    %cst_15 = arith.constant 1676.90247 : f32
    %36 = vector.broadcast %cst_15 : f32 to vector<2x8x8xf32>
    %37 = arith.addf %35, %36 : vector<2x8x8xf32>
    %cst_16 = arith.constant 2.000000e+00 : f32
    %38 = vector.broadcast %cst_16 : f32 to vector<2x8x8xf32>
    %39 = arith.mulf %38, %33 : vector<2x8x8xf32>
    %cst_17 = arith.constant 6707.60986 : f32
    %40 = vector.broadcast %cst_17 : f32 to vector<2x8x8xf32>
    %41 = arith.addf %39, %40 : vector<2x8x8xf32>
    %42 = arith.mulf %37, %41 : vector<2x8x8xf32>
    %43 = arith.addf %28, %29 : vector<2x8x8xf32>
    %cst_18 = arith.constant 1676.90247 : f32
    %44 = vector.broadcast %cst_18 : f32 to vector<2x8x8xf32>
    %45 = arith.addf %43, %44 : vector<2x8x8xf32>
    %46 = arith.addf %31, %32 : vector<2x8x8xf32>
    %cst_19 = arith.constant 6707.60986 : f32
    %47 = vector.broadcast %cst_19 : f32 to vector<2x8x8xf32>
    %48 = arith.addf %46, %47 : vector<2x8x8xf32>
    %49 = arith.mulf %45, %48 : vector<2x8x8xf32>
    %50 = tpu.reciprocal %49 {approx = true} : vector<2x8x8xf32> -> vector<2x8x8xf32>
    %51 = arith.mulf %49, %50 : vector<2x8x8xf32>
    %cst_20 = arith.constant 2.000000e+00 : f32
    %52 = vector.broadcast %cst_20 : f32 to vector<2x8x8xf32>
    %53 = arith.subf %52, %51 : vector<2x8x8xf32>
    %54 = arith.mulf %50, %53 : vector<2x8x8xf32>
    %55 = arith.mulf %42, %54 : vector<2x8x8xf32>
    %56 = vector.shape_cast %55 : vector<2x8x8xf32> to vector<1x2x8x8xf32>
    %cst_21 = arith.constant dense<0.000000e+00> : vector<1xf32>
    %57 = vector.multi_reduction <add>, %56, %cst_21 [1, 2, 3] : vector<1x2x8x8xf32> to vector<1xf32>
    %58 = vector.shape_cast %57 : vector<1xf32> to vector<1x1x1x1xf32>
    %59 = vector.extract %58[0, 0, 0, 0] : f32 from vector<1x1x1x1xf32>
    %60 = vector.broadcast %59 : f32 to vector<1x1x1xf32>
    %c0_22 = arith.constant 0 : index
    %c0_23 = arith.constant 0 : index
    %c0_24 = arith.constant 0 : index
    %61 = vector.load %arg6[%c0_22, %c0_23, %c0_24] : memref<1x1x1xf32, #tpu.memory_space<vmem>>, vector<1x1x1xf32>
    tpu.vector_store %arg6[%c0_22, %c0_23, %c0_24], %60 {strides = array<i32>} : memref<1x1x1xf32, #tpu.memory_space<vmem>>, vector<1x1x1xf32>,
    return
  }
  func.func @transform_0(%arg0: i32) -> (i32, i32) {
    %c0_i32 = arith.constant 0 : i32
    %c0_i32_0 = arith.constant 0 : i32
    %c0_i32_1 = arith.constant 0 : i32
    return %c0_i32, %c0_i32_0 : i32, i32
  }
  func.func @transform_1(%arg0: i32) -> (i32, i32) {
    %c0_i32 = arith.constant 0 : i32
    %c0_i32_0 = arith.constant 0 : i32
    %c0_i32_1 = arith.constant 0 : i32
    return %c0_i32, %c0_i32_0 : i32, i32
  }
  func.func @transform_2(%arg0: i32) -> (i32, i32, i32) {
    %c0_i32 = arith.constant 0 : i32
    %c0_i32_0 = arith.constant 0 : i32
    %c0_i32_1 = arith.constant 0 : i32
    return %arg0, %c0_i32, %c0_i32_0 : i32, i32, i32
  }
  func.func @transform_3(%arg0: i32) -> (i32, i32, i32) {
    %c0_i32 = arith.constant 0 : i32
    %c0_i32_0 = arith.constant 0 : i32
    %c0_i32_1 = arith.constant 0 : i32
    return %arg0, %c0_i32, %c0_i32_0 : i32, i32, i32
  }
  func.func @transform_4(%arg0: i32) -> (i32, i32, i32) {
    %c0_i32 = arith.constant 0 : i32
    %c0_i32_0 = arith.constant 0 : i32
    %c0_i32_1 = arith.constant 0 : i32
    return %arg0, %c0_i32, %c0_i32_0 : i32, i32, i32
  }
  func.func @transform_5(%arg0: i32) -> (i32, i32, i32) {
    %c0_i32 = arith.constant 0 : i32
    %c0_i32_0 = arith.constant 0 : i32
    %c0_i32_1 = arith.constant 0 : i32
    return %arg0, %c0_i32, %c0_i32_0 : i32, i32, i32
  }
}

</mosaic_0001>

<bundles_post_ra>
// kernel: tpu_custom_call.1
= control target key start
LH: loop header
LB: loop body
LE: loop exit
PB: predicated region body
PF: predicated region fallthrough
CT: control target
= control target key end

     0   :  { %11 = vsyncpa [#allocation3], 0  ;;  %s1692_s0 = inlined_call_operand.vmem [shape: f32[16,8], index: 0, kind: input, shape index: {}]   ;;  %s1693_s1 = inlined_call_operand.hbm [shape: f32[8,16], index: 1, kind: input, shape index: {}]   ;;  %s1694_s2 = inlined_call_operand.hbm [shape: f32[2,16,16], index: 2, kind: input, shape index: {}]   ;;  %s1695_s3 = inlined_call_operand.vmem [shape: f32[2,16,16], index: 3, kind: input, shape index: {}]   ;;  %s1696_s4 = inlined_call_operand.hbm [shape: f32[1,1,1], index: 4, kind: output, shape index: {0}]   ;;  %s1697_s5 = inlined_call_operand.hbm [shape: f32[1,1,1], index: 5, kind: output, shape index: {1}]  }
   0x1   :  { %12 = vsyncpa [#allocation6], 0 }
   0x2   :  { %13 = vsyncpa [#allocation4], 0 }
   0x3   :  { %14 = vsyncpa [#allocation9], 0  ;;  %s1446_s18 = smov [#allocation2]   ;;  %s1447_s20 = smov [#allocation5]  }
   0x4   :  { %s23_s19 = sshll.u32 %s1446_s18, 4  ;;  %s32_s21 = sshll.u32 %s1447_s20, 4  ;;  %s24_s19 = int_to_ptr.vmem [resolvable:$true] %s23_s19  ;;  %s1485_s21 = int_to_ptr.vmem [resolvable:$true] %s32_s21 }
   0x5   :  { %s1350_s24 = scalar_lea.hbm %s1693_s1, 128 }
   0x6   :  { %p1351_p0 = scmp.ne.s32.totalorder %s1693_s1, %s1350_s24  ;;  %p1354_p1 = scmp.lt.u32.totalorder %s1350_s24, %s1693_s1 }
   0x8   :  { %p1356_p2 = pnand %p1354_p1, %p1351_p0 }
   0xa   :  { %1359 = shalt.err (!%p1356_p2)
}
   0xb   :  { %s1360_s29 = scalar_lea.vmem %s24_s19, 128  ;;  %p1365_p4 = scmp.lt.s32.totalorder %s24_s19, %s24_s19 }
   0xc   :  { %p1361_p3 = scmp.ne.s32.totalorder %s24_s19, %s1360_s29  ;;  %p1366_p5 = scmp.lt.s32.totalorder %s1360_s29, %s1360_s29 }
   0xe   :  { %p1367_p6 = por %p1366_p5, %p1365_p4 }
  0x10   :  { %p1368_p7 = pnand %p1367_p6, %p1361_p3 }
  0x12   :  { %1371 = shalt.err (!%p1368_p7)
}
  0x13   :  { %26 = dma.hbm_to_vmem [thread:$0]  %s1693_s1, 128, %s24_s19, [#allocation3]  }
  0x14   :  { %s1372_s9 = scalar_lea.hbm %s1694_s2, 512 }
  0x15   :  { %p1373_p8 = scmp.ne.s32.totalorder %s1694_s2, %s1372_s9  ;;  %p1376_p9 = scmp.lt.u32.totalorder %s1372_s9, %s1694_s2 }
  0x17   :  { %p1378_p10 = pnand %p1376_p9, %p1373_p8 }
  0x19   :  { %1381 = shalt.err (!%p1378_p10)
}
  0x1a   :  { %s1382_s14 = scalar_lea.vmem %s1485_s21, 512  ;;  %p1387_p12 = scmp.lt.s32.totalorder %s1485_s21, %s1485_s21 }
  0x1b   :  { %p1383_p11 = scmp.ne.s32.totalorder %s1485_s21, %s1382_s14  ;;  %p1388_p13 = scmp.lt.s32.totalorder %s1382_s14, %s1382_s14 }
  0x1d   :  { %p1389_p0 = por %p1388_p13, %p1387_p12 }
  0x1f   :  { %p1390_p1 = pnand %p1389_p0, %p1383_p11 }
  0x21   :  { %1393 = shalt.err (!%p1390_p1)
}
  0x22   :  { %s1448_s1 = smov 128   ;;  %s1449_s15 = smov 8  }
  0x23   :  { %38 = dma.hbm_to_vmem [thread:$0]  %s1694_s2, 512, %s1485_s21, [#allocation6], %s1448_s1, %s1448_s1, %s1449_s15  }
  0x24   :  { %1438 = dma.done.wait [#allocation3], 128  }
  0x25   :  { %1439 = vsyncadd [#allocation3], 4294967168 }
  0x26   :  { %1440 = dma.done.wait [#allocation6], 512  }
  0x27   :  { %1441 = vsyncadd [#allocation6], 4294966784  ;;  %vm63_vm0 = vcmask 130048   ;;  %v95_v0 = vld [vmem:[%s1692_s0] sm:$0xff]  ;;  %v96_v1 = vld [vmem:[%s1692_s0 + $0x8] sm:$0xff]  ;;  %v1450_v23 = vmov 0.0|0.0  }
  0x28   :  { %v1522_v2 = vld [vmem:[#allocation5] sm:$0xff]  ;;  %v1299_v3 = vpack.c.bf16 %v96_v1, %v95_v0  ;;  %v1526_v4 = vld [vmem:[#allocation5 + $0x8] sm:$0xff]  ;;  %v1528_v5 = vld [vmem:[#allocation5 + $0x10] sm:$0xff]  ;;  %1303 = vmatprep.subr.bf16.mxu1 %v1450_v23  ;;  %vm1451_vm1 = vmmov 0   ;;  %v1452_v24 = vmov 0.0   ;;  %vm1068_vm2 = vcmask 64512  }
  0x29   :  { %1199 = vmatprep.mubr.msk.f32.mxu0 %vm63_vm0, %v1522_v2  ;;  %v1534_v6 = vld [vmem:[#allocation5 + $0x18] sm:$0xff]  ;;  %v1539_v7 = vld [vmem:[%s1695_s3] sm:$0xff]  ;;  %v1548_v8 = vld [vmem:[%s1695_s3 + $0x8] sm:$0xff]  ;;  %v83_v11 = vmul.f32 %v1522_v2, %v1522_v2  ;;  %v84_v12 = vmul.f32 %v1526_v4, %v1526_v4  ;;  %v85_v13 = vmul.f32 %v1528_v5, %v1528_v5  ;;  %1233 = vmatprep.mubr.msk.f32.mxu1 %vm1451_vm1, %v1452_v24  ;;  %vm81_vm3 = vcmask 0   ;;  %s1453_s28 = smov [#allocation7]  }
  0x2a   :  { %1300 = vmatprep.subr.bf16.mxu0 %v1299_v3  ;;  %v1553_v9 = vld [vmem:[%s1695_s3 + $0x10] sm:$0xff]  ;;  %v1562_v10 = vld [vmem:[%s1695_s3 + $0x18] sm:$0xff]  ;;  %v86_v14 = vmul.f32 %v1534_v6, %v1534_v6  ;;  %v87_v15 = vmul.f32 %v1539_v7, %v1539_v7  ;;  %v88_v16 = vmul.f32 %v1548_v8, %v1548_v8  ;;  %v91_v19 = vmul.f32 %v1539_v7, %v1522_v2  ;;  %s1089_s29 = sshll.u32 %s1453_s28, 4  ;;  %s1090_s29 = int_to_ptr.vmem [resolvable:$true] %s1089_s29 }
  0x2b   :  { %1302 = vmatpush3.bf16.msra.mxu0 %v1299_v3  ;;  %v89_v17 = vmul.f32 %v1553_v9, %v1553_v9  ;;  %v90_v18 = vmul.f32 %v1562_v10, %v1562_v10  ;;  %v92_v20 = vmul.f32 %v1548_v8, %v1526_v4  ;;  %v93_v21 = vmul.f32 %v1553_v9, %v1528_v5  ;;  %v1605_v29 = vld [vmem:[#allocation2] sm:$0xff]  ;;  %s1394_s30 = scalar_lea.vmem %s1090_s29, 16  ;;  %s1398_s6 = scalar_lea.vmem %s1090_s29, 32 }
  0x2c   :  { %v94_v22 = vmul.f32 %v1562_v10, %v1534_v6  ;;  %v55_v56 = vsub.f32 %v1522_v2, %v1539_v7  ;;  %v56_v57 = vsub.f32 %v1526_v4, %v1548_v8  ;;  %v57_v58 = vsub.f32 %v1528_v5, %v1553_v9  ;;  %p1395_p2 = scmp.ne.s32.totalorder %s1090_s29, %s1394_s30  ;;  %p1399_p3 = scmp.lt.s32.totalorder %s1090_s29, %s1090_s29 }
  0x2d   :  { %v58_v61 = vsub.f32 %v1534_v6, %v1562_v10  ;;  %p1400_p4 = scmp.lt.s32.totalorder %s1398_s6, %s1394_s30 }
  0x2e   :  { %1200 = vmatmul.mubr.msk.f32.vlgmr.msra.gmra.mrb[0].mxu0 %vm63_vm0, %v1526_v4  ;;  %v59_v59 = vmul.f32 %v55_v56, %v55_v56  ;;  %v60_v60 = vmul.f32 %v56_v57, %v56_v57  ;;  %v61_v62 = vmul.f32 %v57_v58, %v57_v58 }
  0x2f   :  { %1202 = vmatprep.mubr.msk.f32.mxu0 %vm63_vm0, %v1528_v5  ;;  %v62_v3 = vmul.f32 %v58_v61, %v58_v61  ;;  %p1401_p5 = por %p1400_p4, %p1399_p3 }
  0x30   :  { %v64_v63 = vsel %vm63_vm0, %v59_v59, 0.0  ;;  %v65_v0 = vsel %vm63_vm0, %v60_v60, 0.0  ;;  %v67_v2 = vsel %vm63_vm0, %v61_v62, 0.0 }
  0x31   :  { %v66_v1 = vadd.f32 %v65_v0, %v64_v63  ;;  %v69_v4 = vsel %vm63_vm0, %v62_v3, 0.0  ;;  %p1402_p6 = pnand %p1401_p5, %p1395_p2 }
  0x32   :  { %1203 = vmatmul.mubr.msk.f32.gmra.mrb[2].mxu0 %vm63_vm0, %v1534_v6 }
  0x33   :  { %1205 = vmatprep.mubr.msk.f32.mxu0 %vm63_vm0, %v1539_v7  ;;  %v68_v7 = vadd.f32 %v67_v2, %v66_v1 }
  0x36   :  { %1206 = vmatmul.mubr.msk.f32.gmra.mrb[4].mxu0 %vm63_vm0, %v1548_v8  ;;  %v70_v8 = vadd.f32 %v69_v4, %v68_v7 }
  0x37   :  { %1208 = vmatprep.mubr.msk.f32.mxu0 %vm63_vm0, %v1553_v9 }
  0x38   :  { %71 = vadd.xlane.f32.xlu0 %v70_v8 }
  0x3a   :  { %1209 = vmatmul.mubr.msk.f32.gmra.mrb[6].mxu0 %vm63_vm0, %v1562_v10 }
  0x3b   :  { %1211 = vmatprep.mubr.msk.f32.mxu0 %vm63_vm0, %v83_v11 }
  0x3e   :  { %1212 = vmatmul.mubr.msk.f32.gmra.mrb[8].mxu0 %vm63_vm0, %v84_v12 }
  0x3f   :  { %1214 = vmatprep.mubr.msk.f32.mxu0 %vm63_vm0, %v85_v13 }
  0x42   :  { %1215 = vmatmul.mubr.msk.f32.gmra.mrb[10].mxu0 %vm63_vm0, %v86_v14 }
  0x43   :  { %1217 = vmatprep.mubr.msk.f32.mxu0 %vm63_vm0, %v87_v15 }
  0x46   :  { %1218 = vmatmul.mubr.msk.f32.gmra.mrb[12].mxu0 %vm63_vm0, %v88_v16 }
  0x47   :  { %1220 = vmatprep.mubr.msk.f32.mxu0 %vm63_vm0, %v89_v17 }
  0x4a   :  { %1221 = vmatmul.mubr.msk.f32.gmra.mrb[14].mxu0 %vm63_vm0, %v90_v18 }
  0x4b   :  { %1223 = vmatprep.mubr.msk.f32.mxu0 %vm63_vm0, %v91_v19 }
  0x4e   :  { %1224 = vmatmul.mubr.msk.f32.gmra.mrb[16].mxu0 %vm63_vm0, %v92_v20 }
  0x4f   :  { %1226 = vmatprep.mubr.msk.f32.mxu0 %vm63_vm0, %v93_v21 }
  0x52   :  { %1227 = vmatmul.mubr.msk.f32.gmra.mrb[18].mxu0 %vm63_vm0, %v94_v22 }
 0x101   :  { %v1201_v25 = vpop.f32.mrb[0].mxu0 }
 0x102   :  { %v223_v26 = vpop.f32.mrb[1].mxu0 }
 0x103   :  { %v1304_v27 = vpack.c.bf16 %v1201_v25, %v223_v26 }
 0x105   :  { %v1204_v28 = vpop.f32.mrb[2].mxu0  ;;  %1305 = vmatpush3.bf16.msra.mxu1 %v1304_v27 }
 0x106   :  { %v233_v30 = vpop.f32.mrb[3].mxu0  ;;  %1306 = vmatprep.subr.bf16.mxu1 %v1450_v23 }
 0x107   :  { %v1307_v31 = vpack.c.bf16 %v1204_v28, %v233_v30 }
 0x108   :  { %1234 = vmatmul.mubr.msk.f32.vlgmr.msra.gmra.mrb[0].mxu1 %vm63_vm0, %v1605_v29 }
 0x109   :  { %v1207_v32 = vpop.f32.mrb[4].mxu0  ;;  %1308 = vmatpush3.bf16.msra.mxu1 %v1307_v31  ;;  %1240 = vmatprep.mubr.msk.f32.mxu1 %vm1451_vm1, %v1452_v24 }
 0x10a   :  { %v243_v33 = vpop.f32.mrb[5].mxu0  ;;  %1309 = vmatprep.subr.bf16.mxu1 %v1450_v23 }
 0x10b   :  { %v1310_v34 = vpack.c.bf16 %v1207_v32, %v243_v33 }
 0x10c   :  { %1241 = vmatmul.mubr.msk.f32.vlgmr.msra.gmra.mrb[2].mxu1 %vm63_vm0, %v1605_v29 }
 0x10d   :  { %v1210_v35 = vpop.f32.mrb[6].mxu0  ;;  %1311 = vmatpush3.bf16.msra.mxu1 %v1310_v34  ;;  %1247 = vmatprep.mubr.msk.f32.mxu1 %vm1451_vm1, %v1452_v24 }
 0x10e   :  { %v253_v36 = vpop.f32.mrb[7].mxu0  ;;  %1312 = vmatprep.subr.bf16.mxu1 %v1450_v23 }
 0x10f   :  { %v1313_v37 = vpack.c.bf16 %v1210_v35, %v253_v36 }
 0x110   :  { %1248 = vmatmul.mubr.msk.f32.vlgmr.msra.gmra.mrb[4].mxu1 %vm63_vm0, %v1605_v29 }
 0x111   :  { %v1213_v38 = vpop.f32.mrb[8].mxu0  ;;  %1314 = vmatpush3.bf16.msra.mxu1 %v1313_v37  ;;  %1254 = vmatprep.mubr.msk.f32.mxu1 %vm1451_vm1, %v1452_v24 }
 0x112   :  { %v263_v39 = vpop.f32.mrb[9].mxu0  ;;  %1315 = vmatprep.subr.bf16.mxu1 %v1450_v23 }
 0x113   :  { %v1316_v40 = vpack.c.bf16 %v1213_v38, %v263_v39 }
 0x114   :  { %1255 = vmatmul.mubr.msk.f32.vlgmr.msra.gmra.mrb[6].mxu1 %vm63_vm0, %v1605_v29 }
 0x115   :  { %v1216_v41 = vpop.f32.mrb[10].mxu0  ;;  %1317 = vmatpush3.bf16.msra.mxu1 %v1316_v40  ;;  %1261 = vmatprep.mubr.msk.f32.mxu1 %vm1451_vm1, %v1452_v24 }
 0x116   :  { %v273_v42 = vpop.f32.mrb[11].mxu0  ;;  %1318 = vmatprep.subr.bf16.mxu1 %v1450_v23 }
 0x117   :  { %v1319_v43 = vpack.c.bf16 %v1216_v41, %v273_v42 }
 0x118   :  { %1262 = vmatmul.mubr.msk.f32.vlgmr.msra.gmra.mrb[8].mxu1 %vm63_vm0, %v1605_v29 }
 0x119   :  { %v1219_v44 = vpop.f32.mrb[12].mxu0  ;;  %1320 = vmatpush3.bf16.msra.mxu1 %v1319_v43  ;;  %1268 = vmatprep.mubr.msk.f32.mxu1 %vm1451_vm1, %v1452_v24 }
 0x11a   :  { %v283_v45 = vpop.f32.mrb[13].mxu0  ;;  %1321 = vmatprep.subr.bf16.mxu1 %v1450_v23 }
 0x11b   :  { %v1322_v46 = vpack.c.bf16 %v1219_v44, %v283_v45 }
 0x11c   :  { %1269 = vmatmul.mubr.msk.f32.vlgmr.msra.gmra.mrb[10].mxu1 %vm63_vm0, %v1605_v29 }
 0x11d   :  { %v1222_v47 = vpop.f32.mrb[14].mxu0  ;;  %1323 = vmatpush3.bf16.msra.mxu1 %v1322_v46  ;;  %1275 = vmatprep.mubr.msk.f32.mxu1 %vm1451_vm1, %v1452_v24 }
 0x11e   :  { %v293_v48 = vpop.f32.mrb[15].mxu0  ;;  %1324 = vmatprep.subr.bf16.mxu1 %v1450_v23 }
 0x11f   :  { %v1325_v49 = vpack.c.bf16 %v1222_v47, %v293_v48 }
 0x120   :  { %1276 = vmatmul.mubr.msk.f32.vlgmr.msra.gmra.mrb[12].mxu1 %vm63_vm0, %v1605_v29 }
 0x121   :  { %v1225_v50 = vpop.f32.mrb[16].mxu0  ;;  %1326 = vmatpush3.bf16.msra.mxu1 %v1325_v49  ;;  %1282 = vmatprep.mubr.msk.f32.mxu1 %vm1451_vm1, %v1452_v24 }
 0x122   :  { %v303_v51 = vpop.f32.mrb[17].mxu0  ;;  %1327 = vmatprep.subr.bf16.mxu1 %v1450_v23 }
 0x123   :  { %v1328_v52 = vpack.c.bf16 %v1225_v50, %v303_v51 }
 0x124   :  { %1283 = vmatmul.mubr.msk.f32.vlgmr.msra.gmra.mrb[14].mxu1 %vm63_vm0, %v1605_v29 }
 0x125   :  { %v1228_v53 = vpop.f32.mrb[18].mxu0  ;;  %1329 = vmatpush3.bf16.msra.mxu1 %v1328_v52  ;;  %1289 = vmatprep.mubr.msk.f32.mxu1 %vm1451_vm1, %v1452_v24 }
 0x126   :  { %v313_v54 = vpop.f32.mrb[19].mxu0  ;;  %1330 = vmatprep.subr.bf16.mxu1 %v1450_v23 }
 0x127   :  { %v1331_v55 = vpack.c.bf16 %v1228_v53, %v313_v54 }
 0x128   :  { %1290 = vmatmul.mubr.msk.f32.vlgmr.msra.gmra.mrb[16].mxu1 %vm63_vm0, %v1605_v29 }
 0x129   :  { %1332 = vmatpush3.bf16.msra.mxu1 %v1331_v55  ;;  %1296 = vmatprep.mubr.msk.f32.mxu1 %vm1451_vm1, %v1452_v24 }
 0x12c   :  { %1297 = vmatmul.mubr.msk.f32.vlgmr.msra.gmra.mrb[18].mxu1 %vm63_vm0, %v1605_v29 }
 0x1db   :  { %v392_v5 = vpop.f32.mrb[0].mxu1 }
 0x1dc   :  { %v1235_v9 = vpop.f32.mrb[1].mxu1  ;;  %v1026_v6 = vmul.f32 %v392_v5, %v392_v5 }
 0x1dd   :  { %v72_v9 = vpop.xlane.xlu0 %71 }
 0x1df   :  { %v462_v11 = vpop.f32.mrb[2].mxu1 }
 0x1e0   :  { %v1242_v12 = vpop.f32.mrb[3].mxu1  ;;  %v1027_v18 = vmul.f32 %v462_v11, %v462_v11 }
 0x1e3   :  { %v532_v13 = vpop.f32.mrb[4].mxu1 }
 0x1e4   :  { %v1028_v10 = vmul.f32 %v532_v13, %v532_v13  ;;  %v1030_v14 = vmul.f32 %v532_v13, %v392_v5  ;;  %v1249_v15 = vpop.f32.mrb[5].mxu1 }
 0x1e6   :  { %v1048_v16 = vadd.f32 %v1028_v10, %v1026_v6  ;;  %v1038_v40 = vmul.f32 2.0, %v1030_v14 }
 0x1e7   :  { %v602_v17 = vpop.f32.mrb[6].mxu1 }
 0x1e8   :  { %v1029_v19 = vmul.f32 %v602_v17, %v602_v17  ;;  %v1031_v20 = vmul.f32 %v602_v17, %v462_v11  ;;  %v1256_v21 = vpop.f32.mrb[7].mxu1  ;;  %v1050_v34 = vadd.f32 1676.9025, %v1048_v16  ;;  %v1040_v48 = vadd.f32 1676.9025, %v1038_v40 }
 0x1e9   :  { %v73_v11 = vrot.slane %v72_v9, 4 }
 0x1ea   :  { %v1049_v22 = vadd.f32 %v1029_v19, %v1027_v18  ;;  %v1039_v50 = vmul.f32 2.0, %v1031_v20 }
 0x1eb   :  { %v672_v23 = vpop.f32.mrb[8].mxu1  ;;  %v74_v12 = vadd.f32 %v73_v11, %v72_v9 }
 0x1ec   :  { %v1032_v24 = vsub.f32 %v672_v23, %v1026_v6  ;;  %v1263_v25 = vpop.f32.mrb[9].mxu1  ;;  %v1051_v42 = vadd.f32 1676.9025, %v1049_v22  ;;  %v1041_v56 = vadd.f32 1676.9025, %v1039_v50 }
 0x1ed   :  { %v75_v13 = vrot.slane %v74_v12, 2 }
 0x1ef   :  { %v742_v26 = vpop.f32.mrb[10].mxu1  ;;  %v76_v6 = vadd.f32 %v75_v13, %v74_v12 }
 0x1f0   :  { %v1033_v27 = vsub.f32 %v742_v26, %v1027_v18  ;;  %v1270_v28 = vpop.f32.mrb[11].mxu1 }
 0x1f3   :  { %v812_v29 = vpop.f32.mrb[12].mxu1 }
 0x1f4   :  { %v1034_v30 = vsub.f32 %v812_v29, %v1028_v10  ;;  %v1277_v31 = vpop.f32.mrb[13].mxu1  ;;  %v77_v10 = vrot.slane %v76_v6, 1 }
 0x1f6   :  { %v1052_v32 = vadd.f32 %v1034_v30, %v1032_v24 }
 0x1f7   :  { %v882_v33 = vpop.f32.mrb[14].mxu1 }
 0x1f8   :  { %v1054_v35 = vadd.f32 6707.61, %v1052_v32  ;;  %v1035_v36 = vsub.f32 %v882_v33, %v1029_v19  ;;  %v1284_v37 = vpop.f32.mrb[15].mxu1 }
 0x1fa   :  { %v1056_v38 = vmul.f32 %v1054_v35, %v1050_v34  ;;  %v1053_v39 = vadd.f32 %v1035_v36, %v1033_v27 }
 0x1fb   :  { %v952_v41 = vpop.f32.mrb[16].mxu1 }
 0x1fc   :  { %1346 = vrcp.f32 %v1056_v38  ;;  %v1055_v43 = vadd.f32 6707.61, %v1053_v39  ;;  %v1036_v44 = vsub.f32 %v952_v41, %v1030_v14  ;;  %v1291_v45 = vpop.f32.mrb[17].mxu1  ;;  %v78_v14 = vadd.f32 %v77_v10, %v76_v6 }
 0x1fe   :  { %v1057_v46 = vmul.f32 %v1055_v43, %v1051_v42  ;;  %v1042_v47 = vmul.f32 2.0, %v1036_v44  ;;  %1333 = vpush %v78_v14 }
 0x1ff   :  { %v1022_v49 = vpop.f32.mrb[18].mxu1 }
 0x200   :  { %1348 = vrcp.f32 %v1057_v46  ;;  %v1044_v51 = vadd.f32 6707.61, %v1042_v47  ;;  %v1037_v52 = vsub.f32 %v1022_v49, %v1031_v20  ;;  %v1298_v53 = vpop.f32.mrb[19].mxu1 }
 0x202   :  { %v1046_v54 = vmul.f32 %v1044_v51, %v1040_v48  ;;  %v1043_v55 = vmul.f32 2.0, %v1037_v52 }
 0x204   :  { %v1045_v57 = vadd.f32 6707.61, %v1043_v55 }
 0x206   :  { %v1347_v58 = vpop.eup %1346  ;;  %v1047_v59 = vmul.f32 %v1045_v57, %v1041_v56 }
 0x207   :  { %v1060_v60 = vmul.f32 %v1347_v58, %v1056_v38 }
 0x209   :  { %v1062_v61 = vsub.f32 2.0, %v1060_v60 }
 0x20a   :  { %v1349_v62 = vpop.eup %1348 }
 0x20b   :  { %v1061_v63 = vmul.f32 %v1349_v62, %v1057_v46  ;;  %v1064_v0 = vmul.f32 %v1347_v58, %v1062_v61 }
 0x20d   :  { %v1063_v1 = vsub.f32 2.0, %v1061_v63  ;;  %v1066_v3 = vmul.f32 %v1064_v0, %v1046_v54 }
 0x20f   :  { %v1065_v2 = vmul.f32 %v1349_v62, %v1063_v1  ;;  %v1069_v4 = vsel %vm1068_vm2, %v1066_v3, 0.0 }
 0x211   :  { %v1067_v7 = vmul.f32 %v1065_v2, %v1047_v59 }
 0x213   :  { %v1070_v8 = vsel %vm1068_vm2, %v1067_v7, 0.0 }
 0x214   :  { %v1071_v5 = vadd.f32 %v1070_v8, %v1069_v4 }
 0x216   :  { %1072 = vadd.xlane.f32.xlu0 %v1071_v5 }
 0x22f   :  { %s1334_s3 = spop %1333 }
 0x230   :  { %v80_v15 = vstv %s1334_s3 }
 0x231   :  { %82 = vst.msk [vmem:[#allocation7] sm:$0x1] %vm81_vm3, %v80_v15 }
 0x232   :  { %1405 = shalt.err (!%p1402_p6)
}
 0x233   :  { %s1406_s9 = scalar_lea.hbm %s1696_s4, 16 }
 0x234   :  { %p1407_p7 = scmp.ne.s32.totalorder %s1696_s4, %s1406_s9  ;;  %p1410_p8 = scmp.lt.u32.totalorder %s1406_s9, %s1696_s4 }
 0x236   :  { %p1412_p9 = pnand %p1410_p8, %p1407_p7 }
 0x238   :  { %1415 = shalt.err (!%p1412_p9)
}
 0x239   :  { %1092 = dma.vmem_to_hbm [thread:$0]  %s1090_s29, 16, %s1696_s4, [#allocation4]  }
 0x23a   :  { %s1454_s15 = smov [#allocation8]  }
 0x23b   :  { %s1099_s16 = sshll.u32 %s1454_s15, 4  ;;  %s1100_s16 = int_to_ptr.vmem [resolvable:$true] %s1099_s16 }
 0x23c   :  { %s1416_s18 = scalar_lea.vmem %s1100_s16, 16  ;;  %s1420_s19 = scalar_lea.vmem %s1100_s16, 32 }
 0x23d   :  { %p1417_p10 = scmp.ne.s32.totalorder %s1100_s16, %s1416_s18  ;;  %p1421_p11 = scmp.lt.s32.totalorder %s1100_s16, %s1100_s16 }
 0x23e   :  { %p1422_p12 = scmp.lt.s32.totalorder %s1420_s19, %s1416_s18 }
 0x240   :  { %p1423_p13 = por %p1422_p12, %p1421_p11 }
 0x242   :  { %p1424_p0 = pnand %p1423_p13, %p1417_p10 }
 0x2a3   :  { %v1073_v16 = vpop.xlane.xlu0 %1072 }
 0x2a4   :  { %v1074_v17 = vrot.slane %v1073_v16, 4 }
 0x2a6   :  { %v1075_v18 = vadd.f32 %v1074_v17, %v1073_v16 }
 0x2a8   :  { %v1076_v19 = vrot.slane %v1075_v18, 2 }
 0x2aa   :  { %v1077_v20 = vadd.f32 %v1076_v19, %v1075_v18 }
 0x2ac   :  { %v1078_v21 = vrot.slane %v1077_v20, 1 }
 0x2ae   :  { %v1079_v22 = vadd.f32 %v1078_v21, %v1077_v20 }
 0x2b0   :  { %1335 = vpush %v1079_v22 }
 0x2e1   :  { %s1336_s17 = spop %1335 }
 0x2e2   :  { %v1081_v23 = vstv %s1336_s17 }
 0x2e3   :  { %1082 = vst.msk [vmem:[#allocation8] sm:$0x1] %vm81_vm3, %v1081_v23 }
 0x2e4   :  { %1427 = shalt.err (!%p1424_p0)
}
 0x2e5   :  { %s1428_s22 = scalar_lea.hbm %s1697_s5, 16 }
 0x2e6   :  { %p1429_p1 = scmp.ne.s32.totalorder %s1697_s5, %s1428_s22  ;;  %p1432_p2 = scmp.lt.u32.totalorder %s1428_s22, %s1697_s5 }
 0x2e8   :  { %p1434_p3 = pnand %p1432_p2, %p1429_p1 }
 0x2ea   :  { %1437 = shalt.err (!%p1434_p3)
}
 0x2eb   :  { %1102 = dma.vmem_to_hbm [thread:$0]  %s1100_s16, 16, %s1697_s5, [#allocation9]  }
 0x2ec   :  { %1442 = dma.done.wait [#allocation4], 16  }
 0x2ed   :  { %1443 = vsyncadd [#allocation4], 4294967280 }
 0x2ee   :  { %1444 = dma.done.wait [#allocation9], 16  }
 0x2ef   :  { %1445 = vsyncadd [#allocation9], 4294967280 }
 0x2f0   :  { %1109 = vsyncpa [#allocation3], 1 }
 0x2f1   :  { %1110 = vsyncpa [#allocation6], 1 }
 0x2f2   :  { %1111 = vsyncpa [#allocation4], 1 }
 0x2f3   :  { %1112 = vsyncpa [#allocation9], 1 }

</bundles_post_ra>
